<compile_context>
chip_gen: v5e
topology: v5e:2x2
jax: 0.10.0
libtpu: 0.0.40
codegen_flags: <defaults>
</compile_context>

<pallas_src>
import jax
import jax.numpy as jnp
from jax.experimental import pallas as pl
from jax.experimental.pallas import tpu as pltpu

BN_EPS = 1e-5
LANE = 128
# Kernels below need < ~10 MiB double-buffered; 32 MiB leaves headroom for Mosaic
# temporaries and is safe on v5e/v6e (128 MiB) and v7x (64 MiB per TensorCore).
VMEM_LIMIT = 32 * 1024 * 1024


# ----------------------------------------------------------------------------
# in-kernel helpers
# ----------------------------------------------------------------------------
def _mm_cf(w, x):
    """(Cout, Cin) @ (Cin, TN) on the MXU, bf16 operands, f32 accumulate."""
    return jax.lax.dot_general(
        w.astype(jnp.bfloat16), x.astype(jnp.bfloat16),
        dimension_numbers=(((1,), (0,)), ((), ())),
        preferred_element_type=jnp.float32,
    )


def _conv_relu(w, x, b):
    """relu(w @ x + b) for a channels-first tile.

    Cin < 8 (the raw xyz inputs) uses an exact f32 outer-product accumulation on the
    VPU instead of an MXU matmul, so no HBM channel padding is ever needed."""
    cin = w.shape[1]
    if cin < 8:
        w32 = w.astype(jnp.float32)
        x32 = x.astype(jnp.float32)
        acc = w32[:, 0:1] * x32[0:1, :]
        for k in range(1, cin):
            acc = acc + w32[:, k:k + 1] * x32[k:k + 1, :]
        h = acc + b
    else:
        h = _mm_cf(w, x) + b
    return jnp.maximum(h, 0.0)


def _accum_sum_sq(h, ssum_sc, ssq_sc):
    """Accumulate per-channel partial sum / sumsq into lane-dense (C, 128) scratch.
    Pure VPU adds over 128-lane chunks; cross-lane reduce is deferred to the last tile."""
    s = ssum_sc[...]
    q = ssq_sc[...]
    for k in range(0, h.shape[-1], LANE):
        c = h[:, k:k + LANE]
        s = s + c
        q = q + c * c
    ssum_sc[...] = s
    ssq_sc[...] = q


# ----------------------------------------------------------------------------
# Pallas kernels
# ----------------------------------------------------------------------------
def smlp_stats_kernel(x_ref, w_ref, b_ref, h_ref, ssum_ref, ssq_ref, ssum_sc, ssq_sc):
    """1x1-conv + bias + ReLU; bf16 activation out + deferred per-channel sum/sumsq."""
    j = pl.program_id(1)

    @pl.when(j == 0)
    def _init():
        ssum_sc[...] = jnp.zeros_like(ssum_sc)
        ssq_sc[...] = jnp.zeros_like(ssq_sc)

    h = _conv_relu(w_ref[0], x_ref[0], b_ref[0])
    h_ref[0] = h.astype(h_ref.dtype)
    _accum_sum_sq(h, ssum_sc, ssq_sc)

    @pl.when(j == pl.num_programs(1) - 1)
    def _finalize():
        ssum_ref[0] = jnp.sum(ssum_sc[...], axis=-1, keepdims=True)
        ssq_ref[0] = jnp.sum(ssq_sc[...], axis=-1, keepdims=True)


def smlp_reduce_kernel(x_ref, w_ref, b_ref, maxo_ref, mino_ref, ssum_ref, ssq_ref,
                       max_sc, min_sc, ssum_sc, ssq_sc):
    """1x1-conv + bias + ReLU fused with the max-pool: per-batch running max/min plus
    BN stats accumulated in lane-dense VMEM scratch.  Never materializes (Cout, N)."""
    j = pl.program_id(1)

    @pl.when(j == 0)
    def _init():
        max_sc[...] = jnp.full_like(max_sc, -jnp.inf)
        min_sc[...] = jnp.full_like(min_sc, jnp.inf)
        ssum_sc[...] = jnp.zeros_like(ssum_sc)
        ssq_sc[...] = jnp.zeros_like(ssq_sc)

    h = _conv_relu(w_ref[0], x_ref[0], b_ref[0])
    mx = max_sc[...]
    mn = min_sc[...]
    s = ssum_sc[...]
    q = ssq_sc[...]
    for k in range(0, h.shape[-1], LANE):
        c = h[:, k:k + LANE]
        mx = jnp.maximum(mx, c)
        mn = jnp.minimum(mn, c)
        s = s + c
        q = q + c * c
    max_sc[...] = mx
    min_sc[...] = mn
    ssum_sc[...] = s
    ssq_sc[...] = q

    @pl.when(j == pl.num_programs(1) - 1)
    def _finalize():
        maxo_ref[0] = jnp.max(max_sc[...], axis=-1, keepdims=True)
        mino_ref[0] = jnp.min(min_sc[...], axis=-1, keepdims=True)
        ssum_ref[0] = jnp.sum(ssum_sc[...], axis=-1, keepdims=True)
        ssq_ref[0] = jnp.sum(ssq_sc[...], axis=-1, keepdims=True)


def transform_conv_kernel(h1_ref, m_ref, c_ref, w_ref, b_ref,
                          lf_ref, h2_ref, ssum_ref, ssq_ref, ssum_sc, ssq_sc):
    """Fused per-batch feature transform + following 64->128 conv:
       local = M[b] @ h1 + c[b]      (module output local_feature, f32)
       h2    = relu(W2 @ local + b2) (bf16) plus its deferred BN stats.
    Removes the HBM round-trip of local_feature between two pallas_calls."""
    j = pl.program_id(1)

    @pl.when(j == 0)
    def _init():
        ssum_sc[...] = jnp.zeros_like(ssum_sc)
        ssq_sc[...] = jnp.zeros_like(ssq_sc)

    t = _mm_cf(m_ref[0], h1_ref[0]) + c_ref[0]
    lf_ref[0] = t.astype(lf_ref.dtype)
    h2 = jnp.maximum(_mm_cf(w_ref[0], t) + b_ref[0], 0.0)
    h2_ref[0] = h2.astype(h2_ref.dtype)
    _accum_sum_sq(h2, ssum_sc, ssq_sc)

    @pl.when(j == pl.num_programs(1) - 1)
    def _finalize():
        ssum_ref[0] = jnp.sum(ssum_sc[...], axis=-1, keepdims=True)
        ssq_ref[0] = jnp.sum(ssq_sc[...], axis=-1, keepdims=True)


def tnet_head_kernel(x_ref, w1_ref, b1_ref, g1_ref, be1_ref,
                     w2_ref, b2_ref, g2_ref, be2_ref,
                     wf_ref, bf_ref, iden_ref, o_ref):
    """Fused T-net head: (fc + ReLU + BN-over-batch) x2 + final fc + identity.
    Weights arrive in bf16 (halves the weight DMA); accumulation and BN are f32 with the
    centered-variance form."""
    def fc(h, wr, br):
        return jax.lax.dot_general(
            h.astype(jnp.bfloat16), wr[...],
            dimension_numbers=(((1,), (1,)), ((), ())),
            preferred_element_type=jnp.float32) + br[...]

    def bn(h, gr, ber):
        m = h.shape[0]
        mean = jnp.sum(h, axis=0, keepdims=True) / m
        d = h - mean
        var = jnp.sum(d * d, axis=0, keepdims=True) / m
        return gr[...] * d * jax.lax.rsqrt(var + BN_EPS) + ber[...]

    h = bn(jnp.maximum(fc(x_ref[...], w1_ref, b1_ref), 0.0), g1_ref, be1_ref)
    h = bn(jnp.maximum(fc(h, w2_ref, b2_ref), 0.0), g2_ref, be2_ref)
    o_ref[...] = fc(h, wf_ref, bf_ref) + iden_ref[...]


# ----------------------------------------------------------------------------
# pallas_call wrappers
# ----------------------------------------------------------------------------
def _pick_tile(N, tn=None, cap=2048):
    assert N % LANE == 0, f"N={N} must be a multiple of {LANE}"
    if tn is not None:
        assert N % tn == 0 and tn % LANE == 0
        return tn
    for t in (2048, 1024, 512, 256, 128):
        if t <= cap and N % t == 0:
            return t
    return LANE


def _full_spec(shape):
    return pl.BlockSpec(shape, lambda i: (0,) * len(shape))


def _cparams(semantics):
    return pltpu.CompilerParams(dimension_semantics=semantics,
                                vmem_limit_bytes=VMEM_LIMIT)


def smlp_pass(x, W, b, tn=None):
    """x: (B, Cin, N), W: (1|B, Cout, Cin), b: (Cout,).
    Returns h = relu(conv(x)+b) stored bf16 (B, Cout, N) plus f32 sum/sumsq over B*N."""
    B, Cin, N = x.shape
    Wb, Cout, _ = W.shape
    tn = _pick_tile(N, tn)
    W = W.astype(jnp.bfloat16) if Cin >= 8 else W.astype(jnp.float32)
    b3 = b.reshape(1, Cout, 1).astype(jnp.float32)
    w_idx = (lambda bi, j: (bi, 0, 0)) if Wb > 1 else (lambda bi, j: (0, 0, 0))
    stat_spec = pl.BlockSpec((1, Cout, 1), lambda bi, j: (bi, 0, 0))
    stat_shape = jax.ShapeDtypeStruct((B, Cout, 1), jnp.float32)

    h, ssum, ssq = pl.pallas_call(
        smlp_stats_kernel,
        grid=(B, N // tn),
        in_specs=[pl.BlockSpec((1, Cin, tn), lambda bi, j: (bi, 0, j)),
                  pl.BlockSpec((1, Cout, Cin), w_idx),
                  pl.BlockSpec((1, Cout, 1), lambda bi, j: (0, 0, 0))],
        out_specs=[pl.BlockSpec((1, Cout, tn), lambda bi, j: (bi, 0, j)),
                   stat_spec, stat_spec],
        out_shape=[jax.ShapeDtypeStruct((B, Cout, N), jnp.bfloat16),
                   stat_shape, stat_shape],
        scratch_shapes=[pltpu.VMEM((Cout, LANE), jnp.float32),
                        pltpu.VMEM((Cout, LANE), jnp.float32)],
        compiler_params=_cparams(("parallel", "arbitrary")),
    )(x, W, b3)
    return h, jnp.sum(ssum, axis=(0, 2)), jnp.sum(ssq, axis=(0, 2))


def smlp_reduce(x, W, b, tn=None):
    """Fused conv+ReLU+max/min over N+BN stats.
    Returns (max (B,Cout), min (B,Cout), sum (Cout,), sumsq (Cout,))."""
    B, Cin, N = x.shape
    Wb, Cout, _ = W.shape
    tn = _pick_tile(N, tn, cap=1024)  # keep the (Cout, tn) f32 temporary <= 4 MiB
    W = W.astype(jnp.bfloat16) if Cin >= 8 else W.astype(jnp.float32)
    b3 = b.reshape(1, Cout, 1).astype(jnp.float32)
    w_idx = (lambda bi, j: (bi, 0, 0)) if Wb > 1 else (lambda bi, j: (0, 0, 0))
    stat_spec = pl.BlockSpec((1, Cout, 1), lambda bi, j: (bi, 0, 0))
    stat_shape = jax.ShapeDtypeStruct((B, Cout, 1), jnp.float32)

    maxv, minv, ssum, ssq = pl.pallas_call(
        smlp_reduce_kernel,
        grid=(B, N // tn),
        in_specs=[pl.BlockSpec((1, Cin, tn), lambda bi, j: (bi, 0, j)),
                  pl.BlockSpec((1, Cout, Cin), w_idx),
                  pl.BlockSpec((1, Cout, 1), lambda bi, j: (0, 0, 0))],
        out_specs=[stat_spec, stat_spec, stat_spec, stat_spec],
        out_shape=[stat_shape] * 4,
        scratch_shapes=[pltpu.VMEM((Cout, LANE), jnp.float32)] * 4,
        compiler_params=_cparams(("parallel", "arbitrary")),
    )(x, W, b3)
    return (maxv[..., 0], minv[..., 0],
            jnp.sum(ssum, axis=(0, 2)), jnp.sum(ssq, axis=(0, 2)))


def transform_conv_pass(h1, M, c, W2, b2, tn=None):
    """Fused feature transform + 64->128 conv.
    h1: (B, Ci, N); M: (B, Cot, Ci); c: (B, Cot, 1); W2: (Cout, Cot); b2: (Cout,).
    Returns (local_feature f32 (B,Cot,N), h2 bf16 (B,Cout,N), sum (Cout,), sumsq (Cout,))."""
    B, Ci, N = h1.shape
    Cot = M.shape[1]
    Cout = W2.shape[0]
    tn = _pick_tile(N, tn)
    stat_spec = pl.BlockSpec((1, Cout, 1), lambda bi, j: (bi, 0, 0))
    stat_shape = jax.ShapeDtypeStruct((B, Cout, 1), jnp.float32)

    lf, h2, ssum, ssq = pl.pallas_call(
        transform_conv_kernel,
        grid=(B, N // tn),
        in_specs=[pl.BlockSpec((1, Ci, tn), lambda bi, j: (bi, 0, j)),
                  pl.BlockSpec((1, Cot, Ci), lambda bi, j: (bi, 0, 0)),
                  pl.BlockSpec((1, Cot, 1), lambda bi, j: (bi, 0, 0)),
                  pl.BlockSpec((1, Cout, Cot), lambda bi, j: (0, 0, 0)),
                  pl.BlockSpec((1, Cout, 1), lambda bi, j: (0, 0, 0))],
        out_specs=[pl.BlockSpec((1, Cot, tn), lambda bi, j: (bi, 0, j)),
                   pl.BlockSpec((1, Cout, tn), lambda bi, j: (bi, 0, j)),
                   stat_spec, stat_spec],
        out_shape=[jax.ShapeDtypeStruct((B, Cot, N), jnp.float32),
                   jax.ShapeDtypeStruct((B, Cout, N), jnp.bfloat16),
                   stat_shape, stat_shape],
        scratch_shapes=[pltpu.VMEM((Cout, LANE), jnp.float32),
                        pltpu.VMEM((Cout, LANE), jnp.float32)],
        compiler_params=_cparams(("parallel", "arbitrary")),
    )(h1, M.astype(jnp.bfloat16), c.astype(jnp.float32),
      W2.astype(jnp.bfloat16)[None], b2.reshape(1, Cout, 1).astype(jnp.float32))
    return lf, h2, jnp.sum(ssum, axis=(0, 2)), jnp.sum(ssq, axis=(0, 2))


def tnet_head(pooled, p):
    """pooled: (B, 1024) -> (B, k*k). Whole head fused; bf16 weights stay in VMEM."""
    B = pooled.shape[0]
    kk = p["final"]["W"].shape[0]
    bf = jnp.bfloat16
    args = [
        pooled.astype(jnp.float32),
        p["fc1"]["W"].astype(bf), p["fc1"]["b"].reshape(1, -1),
        p["fc1"]["gamma"].reshape(1, -1), p["fc1"]["beta"].reshape(1, -1),
        p["fc2"]["W"].astype(bf), p["fc2"]["b"].reshape(1, -1),
        p["fc2"]["gamma"].reshape(1, -1), p["fc2"]["beta"].reshape(1, -1),
        p["final"]["W"].astype(bf), p["final"]["b"].reshape(1, -1), p["iden"],
    ]
    return pl.pallas_call(
        tnet_head_kernel,
        grid=(1,),
        in_specs=[_full_spec(a.shape) for a in args],
        out_specs=_full_spec((B, kk)),
        out_shape=jax.ShapeDtypeStruct((B, kk), jnp.float32),
        compiler_params=_cparams(("arbitrary",)),
    )(*args)


# ----------------------------------------------------------------------------
# BatchNorm folding helpers (plain JAX on tiny per-channel vectors)
# ----------------------------------------------------------------------------
def bn_scale_shift(ssum, ssq, count, gamma, beta):
    # sumsq/n - mean^2 can cancel; the clamp keeps it sane (train-mode BN over B*N points).
    mean = ssum / count
    var = jnp.maximum(ssq / count - mean * mean, 0.0)
    scale = gamma * jax.lax.rsqrt(var + BN_EPS)
    shift = beta - mean * scale
    return scale, shift


def fold_into_next(W, b, scale, shift):
    """Next layer sees y = scale*h + shift per input channel: W@y + b == W_eff@h + b_eff."""
    return W * scale[None, :], b + W @ shift


# ----------------------------------------------------------------------------
# Parameter construction (deterministic, PyTorch-style uniform fan-in bounds)
# ----------------------------------------------------------------------------
def init_conv_bn(key, cin, cout):
    kw, kb = jax.random.split(key)
    bound = 1.0 / (cin ** 0.5)
    return {"W": jax.random.uniform(kw, (cout, cin), jnp.float32, -bound, bound),
            "b": jax.random.uniform(kb, (cout,), jnp.float32, -bound, bound),
            "gamma": jnp.ones((cout,), jnp.float32),
            "beta": jnp.zeros((cout,), jnp.float32)}


def init_linear(key, cin, cout):
    kw, kb = jax.random.split(key)
    bound = 1.0 / (cin ** 0.5)
    return {"W": jax.random.uniform(kw, (cout, cin), jnp.float32, -bound, bound),
            "b": jax.random.uniform(kb, (cout,), jnp.float32, -bound, bound)}


def init_tnet(key, k):
    ks = jax.random.split(key, 6)
    return {"mlp1": init_conv_bn(ks[0], k, 64),
            "mlp2": init_conv_bn(ks[1], 64, 128),
            "mlp3": init_conv_bn(ks[2], 128, 1024),
            "fc1": init_conv_bn(ks[3], 1024, 512),
            "fc2": init_conv_bn(ks[4], 512, 256),
            "final": init_linear(ks[5], 256, k * k),
            "iden": jnp.eye(k, dtype=jnp.float32).reshape(1, k * k)}


def init_pointnet(key):
    ks = jax.random.split(key, 5)
    return {"input_tnet": init_tnet(ks[0], 3),
            "mlp1": init_conv_bn(ks[1], 3, 64),
            "feat_tnet": init_tnet(ks[2], 64),
            "smlp2a": init_conv_bn(ks[3], 64, 128),
            "smlp2b": init_conv_bn(ks[4], 128, 1024)}


# ----------------------------------------------------------------------------
# Forward pass
# ----------------------------------------------------------------------------
def tnet_forward(x, p, k, in_scale=None, in_shift=None, tn=None):
    """x: (B, k, N) raw (pre-BN) input. Optional (scale, shift) of the producing BN is
    folded into the first layer so the normalized input is never materialized."""
    B, _, N = x.shape
    count = B * N
    W1, b1 = p["mlp1"]["W"], p["mlp1"]["b"]
    if in_scale is not None:
        W1, b1 = fold_into_next(W1, b1, in_scale, in_shift)
    h1, s1, q1 = smlp_pass(x, W1[None], b1, tn=tn)
    sc1, sh1 = bn_scale_shift(s1, q1, count, p["mlp1"]["gamma"], p["mlp1"]["beta"])

    W2, b2 = fold_into_next(p["mlp2"]["W"], p["mlp2"]["b"], sc1, sh1)
    h2, s2, q2 = smlp_pass(h1, W2[None], b2, tn=tn)
    sc2, sh2 = bn_scale_shift(s2, q2, count, p["mlp2"]["gamma"], p["mlp2"]["beta"])

    W3, b3 = fold_into_next(p["mlp3"]["W"], p["mlp3"]["b"], sc2, sh2)
    maxv, minv, s3, q3 = smlp_reduce(h2, W3[None], b3, tn=tn)   # no (B,1024,N) in HBM
    sc3, sh3 = bn_scale_shift(s3, q3, count, p["mlp3"]["gamma"], p["mlp3"]["beta"])
    pooled = jnp.where(sc3 > 0, sc3 * maxv, sc3 * minv) + sh3   # == max_n(BN(h3)) exactly

    mats = tnet_head(pooled, p)                                 # (B, k*k)
    return mats.reshape(B, k, k)


def pointnet_backbone(x, params, tn=None):
    """x: (B, 3, N) float32 (PyTorch NCW). Returns (local (B,64,N), global (B,1024))."""
    B, _, N = x.shape
    count = B * N

    # input transform: Tnet(3) on raw x; its matrix folded into shared_mlp1's weights
    mat3 = tnet_forward(x, params["input_tnet"], 3, tn=tn)                 # (B,3,3)
    W1b = jnp.einsum("oc,bcj->boj", params["mlp1"]["W"], mat3)             # (B,64,3)
    h1, s1, q1 = smlp_pass(x, W1b, params["mlp1"]["b"], tn=tn)             # raw relu(conv)
    sc1, sh1 = bn_scale_shift(s1, q1, count,
                              params["mlp1"]["gamma"], params["mlp1"]["beta"])

    # feature transform: Tnet(64) on BN1(h1) with BN1 folded into its first layer
    mat64 = tnet_forward(h1, params["feat_tnet"], 64,
                         in_scale=sc1, in_shift=sh1, tn=tn)                # (B,64,64)
    M_eff = mat64 * sc1[None, None, :]                                     # fold BN1
    c_eff = jnp.einsum("bij,j->bi", mat64, sh1)[..., None]                 # (B,64,1)

    # fused: local_feature = M_eff @ h1 + c_eff, then smlp2a (64->128) + its stats
    local_feature, h2, s2, q2 = transform_conv_pass(
        h1, M_eff, c_eff, params["smlp2a"]["W"], params["smlp2a"]["b"], tn=tn)
    sc2, sh2 = bn_scale_shift(s2, q2, count,
                              params["smlp2a"]["gamma"], params["smlp2a"]["beta"])

    # smlp2b 128->1024 fused with the max pool
    W3, b3 = fold_into_next(params["smlp2b"]["W"], params["smlp2b"]["b"], sc2, sh2)
    maxv, minv, s3, q3 = smlp_reduce(h2, W3[None], b3, tn=tn)
    sc3, sh3 = bn_scale_shift(s3, q3, count,
                              params["smlp2b"]["gamma"], params["smlp2b"]["beta"])
    global_feature = jnp.where(sc3 > 0, sc3 * maxv, sc3 * minv) + sh3      # (B,1024)

    return local_feature, global_feature


# TODO(synk): BatchNorm1d running_mean/running_var buffer updates (training-time side
# effects) are not modeled; the forward uses batch statistics as in train mode.


# ----------------------------------------------------------------------------
# Checks
# ----------------------------------------------------------------------------
def _assert_close(got, want, atol=5e-2, rtol=5e-2, name=""):
    got = jnp.asarray(got, jnp.float32)
    want = jnp.asarray(want, jnp.float32)
    err = float(jnp.max(jnp.abs(got - want)))
    bound = atol + rtol * float(jnp.max(jnp.abs(want)))
    assert err <= bound, f"{name}: max abs err {err} > {bound}"


def _ref_tnet_head(pooled, p):
    bf = jnp.bfloat16

    def fc(h, layer):
        return jnp.einsum("bi,oi->bo", h.astype(bf), layer["W"].astype(bf),
                          preferred_element_type=jnp.float32) + layer["b"][None, :]

    def bn(h, layer):
        mean = jnp.mean(h, axis=0, keepdims=True)
        d = h - mean
        var = jnp.mean(d * d, axis=0, keepdims=True)
        return (layer["gamma"][None, :] * d / jnp.sqrt(var + BN_EPS)
                + layer["beta"][None, :])

    h = bn(jnp.maximum(fc(pooled, p["fc1"]), 0.0), p["fc1"])
    h = bn(jnp.maximum(fc(h, p["fc2"]), 0.0), p["fc2"])
    return fc(h, p["final"]) + p["iden"]


if __name__ == "__main__":
    key = jax.random.PRNGKey(0)
    kx, kp, kt = jax.random.split(key, 3)
    B, N = 4, 256
    x = jax.random.normal(kx, (B, 3, N), dtype=jnp.float32)
    params = init_pointnet(kp)
    kk = jax.random.split(kt, 12)

    # (1) fused conv + ReLU + deferred stats kernel (shared weights, MXU path)
    xt = jax.random.normal(kk[0], (2, 64, 256), jnp.float32)
    Wt = jax.random.uniform(kk[1], (128, 64), jnp.float32, -0.125, 0.125)
    bt = jax.random.uniform(kk[2], (128,), jnp.float32, -0.125, 0.125)
    h, s, q = smlp_pass(xt, Wt[None], bt, tn=128)
    h_r = jnp.maximum(jnp.einsum("oc,bcn->bon", Wt, xt) + bt[None, :, None], 0.0)
    _assert_close(h, h_r, name="smlp_pass h")
    _assert_close(s, h_r.sum(axis=(0, 2)), name="smlp_pass sum")
    _assert_close(q, (h_r * h_r).sum(axis=(0, 2)), name="smlp_pass sumsq")

    # (2) per-batch-weight variant (folded-transform path, Cin=3, VPU small-K path)
    Wb3 = jax.random.uniform(kk[3], (2, 64, 3), jnp.float32, -0.5, 0.5)
    x3 = jax.random.normal(kk[4], (2, 3, 256), jnp.float32)
    b3t = jax.random.uniform(kk[5], (64,), jnp.float32, -0.5, 0.5)
    h, s, q = smlp_pass(x3, Wb3, b3t, tn=128)
    h_r = jnp.maximum(jnp.einsum("boc,bcn->bon", Wb3, x3) + b3t[None, :, None], 0.0)
    _assert_close(h, h_r, name="smlp_pass batched h")
    _assert_close(s, h_r.sum(axis=(0, 2)), name="smlp_pass batched sum")
    _assert_close(q, (h_r * h_r).sum(axis=(0, 2)), name="smlp_pass batched sumsq")

    # (3) fused conv + ReLU + max/min + stats reducer (128 -> 1024, no HBM intermediate)
    xr = jax.random.normal(kk[6], (2, 128, 256), jnp.float32)
    Wr = jax.random.uniform(kk[7], (1024, 128), jnp.float32, -0.088, 0.088)
    br = jax.random.uniform(kk[8], (1024,), jnp.float32, -0.088, 0.088)
    mx, mn, s, q = smlp_reduce(xr, Wr[None], br, tn=128)
    h_r = jnp.maximum(jnp.einsum("oc,bcn->bon", Wr, xr) + br[None, :, None], 0.0)
    _assert_close(mx, h_r.max(axis=-1), name="smlp_reduce max")
    _assert_close(mn, h_r.min(axis=-1), name="smlp_reduce min")
    _assert_close(s, h_r.sum(axis=(0, 2)), name="smlp_reduce sum")
    _assert_close(q, (h_r * h_r).sum(axis=(0, 2)), name="smlp_reduce sumsq")

    # (4) fused transform + 64->128 conv kernel
    Mt = jax.random.normal(kk[9], (2, 64, 64), jnp.float32) * 0.2
    ct = jax.random.normal(kk[10], (2, 64, 1), jnp.float32) * 0.2
    xm = jax.random.normal(kk[11], (2, 64, 256), jnp.float32)
    W2t = jax.random.uniform(kk[1], (128, 64), jnp.float32, -0.1, 0.1)
    b2t = jax.random.uniform(kk[2], (128,), jnp.float32, -0.1, 0.1)
    lf, h2c, s2c, q2c = transform_conv_pass(xm, Mt, ct, W2t, b2t, tn=128)
    t_r = jnp.einsum("bij,bjn->bin", Mt, xm) + ct
    h2_r = jnp.maximum(jnp.einsum("oc,bcn->bon", W2t, t_r) + b2t[None, :, None], 0.0)
    _assert_close(lf, t_r, name="transform_conv local")
    _assert_close(h2c, h2_r, name="transform_conv h2")
    _assert_close(s2c, h2_r.sum(axis=(0, 2)), name="transform_conv sum")
    _assert_close(q2c, (h2_r * h2_r).sum(axis=(0, 2)), name="transform_conv sumsq")

    # (5) fused T-net head kernel (bf16 weights)
    pooled_t = jax.random.normal(kk[0], (8, 1024), jnp.float32)
    _assert_close(tnet_head(pooled_t, params["input_tnet"]),
                  _ref_tnet_head(pooled_t, params["input_tnet"]), name="tnet_head")

    # (6) pure-JAX algebra checks: BN weight-folding and BN+maxpool max/min select
    hh = jnp.maximum(jax.random.normal(kk[3], (2, 16, 64), jnp.float32), 0.0)
    scs = jax.random.normal(kk[4], (16,), jnp.float32) + 0.1          # mixed signs
    shs = jax.random.normal(kk[5], (16,), jnp.float32) * 0.3
    Wn = jax.random.normal(kk[6], (24, 16), jnp.float32) * 0.2
    bn_ = jax.random.normal(kk[7], (24,), jnp.float32) * 0.2
    y = scs[None, :, None] * hh + shs[None, :, None]
    direct = jnp.maximum(jnp.einsum("oc,bcn->bon", Wn, y) + bn_[None, :, None], 0.0)
    Wf_, bf_ = fold_into_next(Wn, bn_, scs, shs)
    folded = jnp.maximum(jnp.einsum("oc,bcn->bon", Wf_, hh) + bf_[None, :, None], 0.0)
    _assert_close(folded, direct, atol=1e-3, rtol=1e-3, name="bn fold algebra")
    pooled_direct = (scs[None, :, None] * hh + shs[None, :, None]).max(axis=-1)
    pooled_select = jnp.where(scs > 0, scs * hh.max(axis=-1), scs * hh.min(axis=-1)) + shs
    _assert_close(pooled_select, pooled_direct, atol=1e-5, rtol=1e-5, name="pool select")

    # ---- end-to-end forward ----
    fwd = jax.jit(lambda xx, pp: pointnet_backbone(xx, pp))
    local_feature, global_feature = fwd(x, params)
    jax.block_until_ready((local_feature, global_feature))
    assert local_feature.shape == (B, 64, N), local_feature.shape
    assert global_feature.shape == (B, 1024), global_feature.shape
    assert bool(jnp.all(jnp.isfinite(local_feature)))
    assert bool(jnp.all(jnp.isfinite(global_feature)))

    print("KERNEL_OK")
</pallas_src>

<mosaic_0001>
module attributes {stable_mosaic.version = 11 : i64} {
  func.func @smlp_stats_kernel(%arg0: i32, %arg1: i32, %arg2: memref<1x64x128xf32, #tpu.memory_space<vmem>>, %arg3: memref<1x128x64xbf16, #tpu.memory_space<vmem>>, %arg4: memref<1x128x1xf32, #tpu.memory_space<vmem>>, %arg5: memref<1x128x128xbf16, #tpu.memory_space<vmem>>, %arg6: memref<1x128x1xf32, #tpu.memory_space<vmem>>, %arg7: memref<1x128x1xf32, #tpu.memory_space<vmem>>, %arg8: memref<128x128xf32, #tpu.memory_space<vmem>>, %arg9: memref<128x128xf32, #tpu.memory_space<vmem>>) attributes {dimension_semantics = [#tpu.dimension_semantics<parallel>, #tpu.dimension_semantics<arbitrary>], iteration_bounds = array<i64: 2, 2>, scalar_prefetch = 0 : i64, scratch_operands = 2 : i64, tpu.core_type = #tpu.core_type<tc>, window_params = [{transform_indices = @transform_0, window_bounds = array<i64: 1, 64, 128>}, {pipeline_mode = #tpu.pipeline_mode<synchronous>, transform_indices = @transform_1, window_bounds = array<i64: 1, 128, 64>}, {pipeline_mode = #tpu.pipeline_mode<synchronous>, transform_indices = @transform_2, window_bounds = array<i64: 1, 128, 1>}, {transform_indices = @transform_3, window_bounds = array<i64: 1, 128, 128>}, {transform_indices = @transform_4, window_bounds = array<i64: 1, 128, 1>}, {transform_indices = @transform_5, window_bounds = array<i64: 1, 128, 1>}]} {
    %c0_i32 = arith.constant 0 : i32
    %0 = arith.cmpi eq, %arg1, %c0_i32 : i32
    %1 = arith.extui %0 : i1 to i32
    %c0_i32_0 = arith.constant 0 : i32
    %2 = arith.cmpi ne, %1, %c0_i32_0 : i32
    scf.if %2 {
      %cst_22 = arith.constant 0.000000e+00 : f32
      %29 = vector.broadcast %cst_22 : f32 to vector<128x128xf32>
      %c0_23 = arith.constant 0 : index
      %c0_24 = arith.constant 0 : index
      %30 = vector.load %arg8[%c0_23, %c0_24] : memref<128x128xf32, #tpu.memory_space<vmem>>, vector<128x128xf32>
      tpu.vector_store %arg8[%c0_23, %c0_24], %29 {strides = array<i32>} : memref<128x128xf32, #tpu.memory_space<vmem>>, vector<128x128xf32>,
      %cst_25 = arith.constant 0.000000e+00 : f32
      %31 = vector.broadcast %cst_25 : f32 to vector<128x128xf32>
      %c0_26 = arith.constant 0 : index
      %c0_27 = arith.constant 0 : index
      %32 = vector.load %arg9[%c0_26, %c0_27] : memref<128x128xf32, #tpu.memory_space<vmem>>, vector<128x128xf32>
      tpu.vector_store %arg9[%c0_26, %c0_27], %31 {strides = array<i32>} : memref<128x128xf32, #tpu.memory_space<vmem>>, vector<128x128xf32>,
    } else {
    }
    %c0 = arith.constant 0 : index
    %c0_1 = arith.constant 0 : index
    %c0_2 = arith.constant 0 : index
    %3 = vector.load %arg3[%c0, %c0_1, %c0_2] : memref<1x128x64xbf16, #tpu.memory_space<vmem>>, vector<1x128x64xbf16>
    %4 = vector.shape_cast %3 : vector<1x128x64xbf16> to vector<128x64xbf16>
    %c0_3 = arith.constant 0 : index
    %c0_4 = arith.constant 0 : index
    %c0_5 = arith.constant 0 : index
    %5 = vector.load %arg2[%c0_3, %c0_4, %c0_5] : memref<1x64x128xf32, #tpu.memory_space<vmem>>, vector<1x64x128xf32>
    %6 = vector.shape_cast %5 : vector<1x64x128xf32> to vector<64x128xf32>
    %c0_6 = arith.constant 0 : index
    %c0_7 = arith.constant 0 : index
    %c0_8 = arith.constant 0 : index
    %7 = vector.load %arg4[%c0_6, %c0_7, %c0_8] : memref<1x128x1xf32, #tpu.memory_space<vmem>>, vector<1x128x1xf32>
    %8 = vector.shape_cast %7 : vector<1x128x1xf32> to vector<128x1xf32>
    %9 = arith.truncf %6 : vector<64x128xf32> to vector<64x128xbf16>
    %cst = arith.constant dense<0.000000e+00> : vector<128x128xf32>
    %10 = tpu.matmul %4, %9, %cst {dimension_numbers = #tpu.dot_dimension_numbers<[1], [0], [0], [1], [0, 0, 1, 1], [], []>} : vector<128x64xbf16>, vector<64x128xbf16>, vector<128x128xf32> -> vector<128x128xf32>
    %11 = vector.broadcast %8 : vector<128x1xf32> to vector<128x128xf32>
    %12 = arith.addf %10, %11 : vector<128x128xf32>
    %cst_9 = arith.constant 0.000000e+00 : f32
    %13 = vector.broadcast %cst_9 : f32 to vector<128x128xf32>
    %14 = arith.maximumf %12, %13 : vector<128x128xf32>
    %15 = arith.truncf %14 : vector<128x128xf32> to vector<128x128xbf16>
    %c0_10 = arith.constant 0 : index
    %c0_11 = arith.constant 0 : index
    %c0_12 = arith.constant 0 : index
    %16 = vector.load %arg5[%c0_10, %c0_11, %c0_12] : memref<1x128x128xbf16, #tpu.memory_space<vmem>>, vector<1x128x128xbf16>
    %17 = vector.shape_cast %16 : vector<1x128x128xbf16> to vector<128x128xbf16>
    %18 = vector.shape_cast %15 : vector<128x128xbf16> to vector<1x128x128xbf16>
    tpu.vector_store %arg5[%c0_10, %c0_11, %c0_12], %18 {strides = array<i32>} : memref<1x128x128xbf16, #tpu.memory_space<vmem>>, vector<1x128x128xbf16>,
    %c0_13 = arith.constant 0 : index
    %c0_14 = arith.constant 0 : index
    %19 = vector.load %arg8[%c0_13, %c0_14] : memref<128x128xf32, #tpu.memory_space<vmem>>, vector<128x128xf32>
    %c0_15 = arith.constant 0 : index
    %c0_16 = arith.constant 0 : index
    %20 = vector.load %arg9[%c0_15, %c0_16] : memref<128x128xf32, #tpu.memory_space<vmem>>, vector<128x128xf32>
    %21 = arith.addf %19, %14 : vector<128x128xf32>
    %22 = arith.mulf %14, %14 : vector<128x128xf32>
    %23 = arith.addf %20, %22 : vector<128x128xf32>
    %c0_17 = arith.constant 0 : index
    %c0_18 = arith.constant 0 : index
    %24 = vector.load %arg8[%c0_17, %c0_18] : memref<128x128xf32, #tpu.memory_space<vmem>>, vector<128x128xf32>
    tpu.vector_store %arg8[%c0_17, %c0_18], %21 {strides = array<i32>} : memref<128x128xf32, #tpu.memory_space<vmem>>, vector<128x128xf32>,
    %c0_19 = arith.constant 0 : index
    %c0_20 = arith.constant 0 : index
    %25 = vector.load %arg9[%c0_19, %c0_20] : memref<128x128xf32, #tpu.memory_space<vmem>>, vector<128x128xf32>
    tpu.vector_store %arg9[%c0_19, %c0_20], %23 {strides = array<i32>} : memref<128x128xf32, #tpu.memory_space<vmem>>, vector<128x128xf32>,
    %c1_i32 = arith.constant 1 : i32
    %26 = arith.cmpi eq, %arg1, %c1_i32 : i32
    %27 = arith.extui %26 : i1 to i32
    %c0_i32_21 = arith.constant 0 : i32
    %28 = arith.cmpi ne, %27, %c0_i32_21 : i32
    scf.if %28 {
      %c0_22 = arith.constant 0 : index
      %c0_23 = arith.constant 0 : index
      %29 = vector.load %arg8[%c0_22, %c0_23] : memref<128x128xf32, #tpu.memory_space<vmem>>, vector<128x128xf32>
      %cst_24 = arith.constant dense<0.000000e+00> : vector<128xf32>
      %30 = vector.multi_reduction <add>, %29, %cst_24 [1] : vector<128x128xf32> to vector<128xf32>
      %31 = vector.shape_cast %30 : vector<128xf32> to vector<128x1xf32>
      %c0_25 = arith.constant 0 : index
      %c0_26 = arith.constant 0 : index
      %c0_27 = arith.constant 0 : index
      %32 = vector.load %arg6[%c0_25, %c0_26, %c0_27] : memref<1x128x1xf32, #tpu.memory_space<vmem>>, vector<1x128x1xf32>
      %33 = vector.shape_cast %32 : vector<1x128x1xf32> to vector<128x1xf32>
      %34 = vector.shape_cast %31 : vector<128x1xf32> to vector<1x128x1xf32>
      tpu.vector_store %arg6[%c0_25, %c0_26, %c0_27], %34 {strides = array<i32>} : memref<1x128x1xf32, #tpu.memory_space<vmem>>, vector<1x128x1xf32>,
      %c0_28 = arith.constant 0 : index
      %c0_29 = arith.constant 0 : index
      %35 = vector.load %arg9[%c0_28, %c0_29] : memref<128x128xf32, #tpu.memory_space<vmem>>, vector<128x128xf32>
      %cst_30 = arith.constant dense<0.000000e+00> : vector<128xf32>
      %36 = vector.multi_reduction <add>, %35, %cst_30 [1] : vector<128x128xf32> to vector<128xf32>
      %37 = vector.shape_cast %36 : vector<128xf32> to vector<128x1xf32>
      %c0_31 = arith.constant 0 : index
      %c0_32 = arith.constant 0 : index
      %c0_33 = arith.constant 0 : index
      %38 = vector.load %arg7[%c0_31, %c0_32, %c0_33] : memref<1x128x1xf32, #tpu.memory_space<vmem>>, vector<1x128x1xf32>
      %39 = vector.shape_cast %38 : vector<1x128x1xf32> to vector<128x1xf32>
      %40 = vector.shape_cast %37 : vector<128x1xf32> to vector<1x128x1xf32>
      tpu.vector_store %arg7[%c0_31, %c0_32, %c0_33], %40 {strides = array<i32>} : memref<1x128x1xf32, #tpu.memory_space<vmem>>, vector<1x128x1xf32>,
    } else {
    }
    return
  }
  func.func @transform_0(%arg0: i32, %arg1: i32) -> (i32, i32, i32) {
    %c0_i32 = arith.constant 0 : i32
    %c0_i32_0 = arith.constant 0 : i32
    return %arg0, %c0_i32, %arg1 : i32, i32, i32
  }
  func.func @transform_1(%arg0: i32, %arg1: i32) -> (i32, i32, i32) {
    %c0_i32 = arith.constant 0 : i32
    %c0_i32_0 = arith.constant 0 : i32
    %c0_i32_1 = arith.constant 0 : i32
    %c0_i32_2 = arith.constant 0 : i32
    return %c0_i32, %c0_i32_0, %c0_i32_1 : i32, i32, i32
  }
  func.func @transform_2(%arg0: i32, %arg1: i32) -> (i32, i32, i32) {
    %c0_i32 = arith.constant 0 : i32
    %c0_i32_0 = arith.constant 0 : i32
    %c0_i32_1 = arith.constant 0 : i32
    %c0_i32_2 = arith.constant 0 : i32
    return %c0_i32, %c0_i32_0, %c0_i32_1 : i32, i32, i32
  }
  func.func @transform_3(%arg0: i32, %arg1: i32) -> (i32, i32, i32) {
    %c0_i32 = arith.constant 0 : i32
    %c0_i32_0 = arith.constant 0 : i32
    return %arg0, %c0_i32, %arg1 : i32, i32, i32
  }
  func.func @transform_4(%arg0: i32, %arg1: i32) -> (i32, i32, i32) {
    %c0_i32 = arith.constant 0 : i32
    %c0_i32_0 = arith.constant 0 : i32
    %c0_i32_1 = arith.constant 0 : i32
    return %arg0, %c0_i32, %c0_i32_0 : i32, i32, i32
  }
  func.func @transform_5(%arg0: i32, %arg1: i32) -> (i32, i32, i32) {
    %c0_i32 = arith.constant 0 : i32
    %c0_i32_0 = arith.constant 0 : i32
    %c0_i32_1 = arith.constant 0 : i32
    return %arg0, %c0_i32, %c0_i32_0 : i32, i32, i32
  }
}

</mosaic_0001>

<bundles_post_ra>
// kernel: tpu_custom_call.1
= control target key start
LH: loop header
LB: loop body
LE: loop exit
PB: predicated region body
PF: predicated region fallthrough
CT: control target
= control target key end

     0   :  { %11 = vsyncpa [#allocation5], 0  ;;  %s1794_s0 = inlined_call_operand.hbm [shape: f32[2,64,256], index: 0, kind: input, shape index: {}]   ;;  %s1795_s1 = inlined_call_operand.vmem [shape: bf16[1,128,64], index: 1, kind: input, shape index: {}]   ;;  %s1796_s2 = inlined_call_operand.vmem [shape: f32[1,128,1], index: 2, kind: input, shape index: {}]   ;;  %s1797_s3 = inlined_call_operand.hbm [shape: bf16[2,128,256], index: 3, kind: output, shape index: {0}]   ;;  %s1798_s4 = inlined_call_operand.vmem [shape: f32[2,128,1], index: 4, kind: output, shape index: {1}]   ;;  %s1799_s5 = inlined_call_operand.vmem [shape: f32[2,128,1], index: 5, kind: output, shape index: {2}]  }
   0x1   :  { %13 = vsyncpa [#allocation5 + $0x1], 0 }
   0x2   :  { %14 = vsyncpa [#allocation6], 0 }
   0x3   :  { %16 = vsyncpa [#allocation6 + $0x1], 0  ;;  %s1413_s18 = smov 0   ;;  %s1415_s19 = smov 0  }
   0x4   :  { %s1417_s20 = smov 0   ;;  %s1419_s21 = smov 0  }
   0x5   :  { %s1421_s22 = smov 0   ;;  %s1423_s23 = smov 0  }
   0x6   :  { %s1425_s24 = smov 0   ;;  %s1427_s25 = smov 0  }
   0x7 LB: > { %1804 = sst [smem:[#allocation10_spill]] %s1353_s20  ;;  %s1026_s26 = sadd.s32 4294967295, %s1373_s25   ;;  %s1373_s25 = sphi %s1427_s25, %s22_s25   ;;  %s1369_s24 = sphi %s1425_s24, %s1823_s24   ;;  %s1365_s23 = sphi %s1423_s23, %s1822_s23   ;;  %s1361_s22 = sphi %s1421_s22, %s1821_s22   ;;  %s1357_s21 = sphi %s1419_s21, %s1820_s21   ;;  %s1353_s20 = sphi %s1417_s20, %s1815_s20   ;;  %s1349_s19 = sphi %s1415_s19, %s1819_s19   ;;  %s1345_s18 = sphi %s1413_s18, %s1818_s18  }
   0x8   : > { %s1027_s27 = sadd.s32 4294967294, %s1373_s25   ;;  %s31_s28 = sadd.s32 1, %s1365_s23 }
   0x9   : > { %s34_s29 = sadd.s32 1, %s1369_s24  ;;  %p32_p0 = scmp.ge.s32.totalorder %s31_s28, 2 }
   0xa   : > { %s43_s30 = sadd.s32 1, %s1353_s20  ;;  %p50_p1 = scmp.ne.s32.totalorder %s1353_s20, %s1349_s19 }
   0xb   : > { %p51_p2 = scmp.eq.s32.totalorder %s1373_s25, 0  ;;  %s1825_s28 = smov (%p32_p0, %s31_s28), 0 }
   0xc   : > { %1805 = sst [smem:[#allocation11_spill]] %s1825_s28  ;;  %s1827_s29 = smov (!%p32_p0, %s34_s29), %s1369_s24 }
   0xd   : > { %s39_s6 = ssub.s32 %s1365_s23, %s1825_s28  ;;  %p1466_p3 = por %p51_p2, %p50_p1 }
   0xe   : > { %p36_p4 = scmp.ge.s32.totalorder %s1827_s29, 2  ;;  %p56_p5 = scmp.ne.s32.totalorder %s1349_s19, %s1345_s18 }
   0xf   : > { %p57_p6 = scmp.eq.s32.totalorder %s1026_s26, 0  ;;  %p124_p7 = scmp.eq.s32.totalorder %s1026_s26, 3 }
  0x10   : > { %s1829_s29 = smov (%p36_p4, %s1827_s29), 0  ;;  %p130_p10 = scmp.eq.s32.totalorder %s1027_s27, 3 }
  0x11   : > { %1807 = sst [smem:[#allocation12_spill]] %s1829_s29  ;;  %p1474_p8 = por %p57_p6, %p56_p5 }
  0x12   : > { %p1478_p9 = por %p124_p7, %p50_p1  ;;  %s38_s10 = ssub.s32 %s1369_s24, %s1829_s29 }
  0x13   : > { %s40_s11 = sor.u32 %s39_s6, %s38_s10  ;;  %p1484_p12 = por %p130_p10, %p56_p5 }
  0x14   : > { %p41_p11 = scmp.eq.s32.totalorder %s40_s11, 0  ;;  %p1168_p13 = scmp.lt.s32.totalorder %s1373_s25, 4 }
  0x15   : > { %s1810_s12 = scalar_select %p1484_p12, 1, 0 }
  0x16   : > { %s208_s13 = sand.u32 1, %s1353_s20   ;;  %s1031_s16 = sshll.u32 %s1369_s24, 4 }
  0x17   : > { %1811 = sst [smem:[#allocation13_spill]] %s1810_s12  ;;  %s1030_s15 = sshll.u32 %s208_s13, 6 }
  0x18   : > { %s1491_s14 = scalar_select %p41_p11, %s1353_s20, %s43_s30  }
  0x19   : > { %s216_s17 = sadd.s32 %s1365_s23, %s1031_s16  ;;  %s212_s26 = scalar_lea.vmem [#allocation4], %s1030_s15 }
  0x1a   : > { %1812 = sst [smem:[#allocation14_spill]] %s1491_s14  ;;  %s221_s28 = sshll.u32 %s212_s26, 4  ;;  %s222_s28 = int_to_ptr.vmem [resolvable:$true] %s221_s28 }
  0x1b   : > { %s1032_s29 = sshll.u32 %s216_s17, 3  ;;  %p1161_p0 = pnand %p1168_p13, %p1466_p3 }
  0x1c   : > { %s218_s10 = scalar_lea.hbm %s1794_s0, %s1032_s29  ;;  %s209_s12 = scalar_lea.sflag [#allocation5], %s208_s13 }
  0x1d   : > { %s219_s11 = sshll.u32 %s218_s10, 4  ;;  %s1375_s30 = smov 256   ;;  %s220_s11 = int_to_ptr.hbm [resolvable:$true] %s219_s11 }
  0x1e   : > { %s1376_s14 = smov 128   ;;  %s1377_s20 = smov 8  }
  0x1f   : > { %1163 = dma.hbm_to_vmem [thread:$0]  (!%p1161_p0), %s220_s11, 1024, %s222_s28, %s209_s12, %s1375_s30, %s1376_s14, %s1377_s20  }
  0x20   : > { %p1033_p1 = scmp.ge.s32.totalorder %s1373_s25, 1  ;;  %p229_p2 = scmp.lt.s32.totalorder %s1373_s25, 5 }
  0x22   : > { %p230_p4 = pnand %p1033_p1, %p229_p2 }
  0x23   : > { %s1503_s15 = sand.u32 (!%p230_p4), 1, %s1349_s19  }
  0x24   : > { %233 = sbr.rel (%p230_p4) target bundleno = 495 (0x1ef), region = 32  ;;  %s1034_s29 = sshll.u32 (!%p230_p4), %s1503_s15, 6 }
  0x25   : > { %s236_s7 = scalar_lea.sflag (!%p230_p4), [#allocation5], %s1503_s15  ;;  %s1507_s16 = scalar_lea.vmem (!%p230_p4), [#allocation4], %s1034_s29 }
  0x29   : > { %1336 = dma.done.wait (%p1474_p8), %s236_s7, 1024  }
  0x2a   : > { %1338 = vsyncadd (%p1474_p8), %s236_s7, 4294966272  ;;  %p277_p3 = scmp.lt.s32.totalorder %s1361_s22, 1  ;;  %s1525_s6 = scalar_lea.vmem [#allocation7], %s1034_s29 }
  0x2b   : > { %p1040_p5 = scmp.ne.s32.totalorder %s1357_s21, 0 }
  0x2c   : > { %s278_s20 = scalar_select %p277_p3, %s1361_s22, 1 }
  0x2d   : > { %291 = sbr.rel (%p1040_p5) target bundleno = 83 (0x53), region = 40 }
  0x2e   : > { %s1087_s28 = sshll.u32 %s278_s20, 7 }
  0x2f   : > { %s1518_s14 = scalar_lea.vmem %s1798_s4, %s1087_s28  ;;  %s1523_s27 = scalar_lea.vmem %s1799_s5, %s1087_s28 }
  0x32   : > { %v1378_v0 = vmov 0.0  }
  0x33   : > { %292 = vst [vmem:[#allocation2 + $0x30] sm:$0xff] %v1378_v0 }
  0x34   : > { %293 = vst [vmem:[#allocation2] sm:$0xff] %v1378_v0 }
  0x35   : > { %294 = vst [vmem:[#allocation2 + $0x58] sm:$0xff] %v1378_v0 }
  0x36   : > { %295 = vst [vmem:[#allocation2 + $0x18] sm:$0xff] %v1378_v0 }
  0x37   : > { %296 = vst [vmem:[#allocation2 + $0x50] sm:$0xff] %v1378_v0 }
  0x38   : > { %297 = vst [vmem:[#allocation2 + $0x68] sm:$0xff] %v1378_v0 }
  0x39   : > { %298 = vst [vmem:[#allocation2 + $0x8] sm:$0xff] %v1378_v0 }
  0x3a   : > { %299 = vst [vmem:[#allocation2 + $0x48] sm:$0xff] %v1378_v0 }
  0x3b   : > { %300 = vst [vmem:[#allocation2 + $0x40] sm:$0xff] %v1378_v0 }
  0x3c   : > { %301 = vst [vmem:[#allocation2 + $0x20] sm:$0xff] %v1378_v0 }
  0x3d   : > { %302 = vst [vmem:[#allocation2 + $0x10] sm:$0xff] %v1378_v0 }
  0x3e   : > { %303 = vst [vmem:[#allocation2 + $0x38] sm:$0xff] %v1378_v0 }
  0x3f   : > { %304 = vst [vmem:[#allocation2 + $0x60] sm:$0xff] %v1378_v0 }
  0x40   : > { %305 = vst [vmem:[#allocation2 + $0x70] sm:$0xff] %v1378_v0 }
  0x41   : > { %306 = vst [vmem:[#allocation2 + $0x78] sm:$0xff] %v1378_v0 }
  0x42   : > { %307 = vst [vmem:[#allocation2 + $0x28] sm:$0xff] %v1378_v0 }
  0x43   : > { %308 = vst [vmem:[#allocation3 + $0x28] sm:$0xff] %v1378_v0 }
  0x44   : > { %309 = vst [vmem:[#allocation3 + $0x68] sm:$0xff] %v1378_v0 }
  0x45   : > { %310 = vst [vmem:[#allocation3 + $0x10] sm:$0xff] %v1378_v0 }
  0x46   : > { %311 = vst [vmem:[#allocation3 + $0x40] sm:$0xff] %v1378_v0 }
  0x47   : > { %312 = vst [vmem:[#allocation3 + $0x48] sm:$0xff] %v1378_v0 }
  0x48   : > { %313 = vst [vmem:[#allocation3 + $0x30] sm:$0xff] %v1378_v0 }
  0x49   : > { %314 = vst [vmem:[#allocation3 + $0x70] sm:$0xff] %v1378_v0 }
  0x4a   : > { %315 = vst [vmem:[#allocation3 + $0x38] sm:$0xff] %v1378_v0 }
  0x4b   : > { %316 = vst [vmem:[#allocation3 + $0x20] sm:$0xff] %v1378_v0 }
  0x4c   : > { %317 = vst [vmem:[#allocation3 + $0x78] sm:$0xff] %v1378_v0 }
  0x4d   : > { %318 = vst [vmem:[#allocation3 + $0x18] sm:$0xff] %v1378_v0 }
  0x4e   : > { %319 = vst [vmem:[#allocation3 + $0x58] sm:$0xff] %v1378_v0 }
  0x4f   : > { %320 = vst [vmem:[#allocation3] sm:$0xff] %v1378_v0 }
  0x50   : > { %321 = vst [vmem:[#allocation3 + $0x8] sm:$0xff] %v1378_v0 }
  0x51   : > { %322 = vst [vmem:[#allocation3 + $0x60] sm:$0xff] %v1378_v0 }
  0x52   : > { %323 = vst [vmem:[#allocation3 + $0x50] sm:$0xff] %v1378_v0 }
  0x53 PF: > { %v350_v1 = vld [vmem:[%s1796_s2 + $0x10] sm:$0xff]  ;;  %v348_v2 = vld [vmem:[%s1796_s2] sm:$0xff]  ;;  %v1379_v4 = vmov 0   ;;  %v347_v5 = vld [vmem:[%s1507_s16 + $0x38] sm:$0xff]  ;;  %vm488_vm0 = vcmask 523264   ;;  %p1081_p6 = scmp.ne.s32.totalorder %s1357_s21, 1 }
  0x54   : > { %v346_v3 = vld [vmem:[%s1507_s16 + $0x30] sm:$0xff]  ;;  %1243 = vset.pattern.permute.xlu1 %v1379_v4  ;;  %1242 = vset.pattern.permute.xlu0 %v1379_v4  ;;  %v344_v6 = vld [vmem:[%s1507_s16 + $0x20] sm:$0xff]  ;;  %v345_v7 = vld [vmem:[%s1507_s16 + $0x28] sm:$0xff] }
  0x55   : > { %380 = vperm.xlu1 %1243, %v350_v1   ;;  %370 = vperm.xlu0 %1242, %v348_v2   ;;  %v367_v8 = vpack.c.bf16 %v347_v5, %v346_v3  ;;  %v366_v9 = vpack.c.bf16 %v345_v7, %v344_v6  ;;  %v342_v10 = vld [vmem:[%s1507_s16 + $0x10] sm:$0xff]  ;;  %v343_v11 = vld [vmem:[%s1507_s16 + $0x18] sm:$0xff]  ;;  %v352_v12 = vld [vmem:[%s1796_s2 + $0x20] sm:$0xff] }
  0x56   : > { %1244 = vset.pattern.permute.xlu2 %v1379_v4  ;;  %v351_v13 = vld [vmem:[%s1796_s2 + $0x18] sm:$0xff]  ;;  %v349_v14 = vld [vmem:[%s1796_s2 + $0x8] sm:$0xff]  ;;  %v365_v15 = vpack.c.bf16 %v343_v11, %v342_v10  ;;  %v340_v16 = vld [vmem:[%s1507_s16] sm:$0xff] }
  0x57   : > { %517 = vmatpush.bf16.msra.mxu0 %v367_v8  ;;  %1144 = vmatpush.bf16.msra.mxu1 %v367_v8  ;;  %v341_v17 = vld [vmem:[%s1507_s16 + $0x8] sm:$0xff]  ;;  %v355_v20 = vld [vmem:[%s1796_s2 + $0x38] sm:$0xff]  ;;  %v354_v21 = vld [vmem:[%s1796_s2 + $0x30] sm:$0xff] }
  0x58   : > { %1145 = vmatpush.bf16.msra.mxu2 %v367_v8  ;;  %1146 = vmatpush.bf16.msra.mxu3 %v367_v8  ;;  %v364_v18 = vpack.c.bf16 %v341_v17, %v340_v16  ;;  %v353_v19 = vld [vmem:[%s1796_s2 + $0x28] sm:$0xff]  ;;  %v1089_v22 = vld [vmem:[%s1795_s1] sm:$0xff]  ;;  %v1091_v23 = vld [vmem:[%s1795_s1 + $0x10] sm:$0xff] }
  0x59   : > { %390 = vperm.xlu2 %1244, %v352_v12   ;;  %v1093_v24 = vld [vmem:[%s1795_s1 + $0x20] sm:$0xff]  ;;  %v1095_v25 = vld [vmem:[%s1795_s1 + $0x30] sm:$0xff]  ;;  %v357_v28 = vld [vmem:[%s1796_s2 + $0x48] sm:$0xff] }
  0x5a   : > { %v356_v26 = vld [vmem:[%s1796_s2 + $0x40] sm:$0xff]  ;;  %v358_v27 = vld [vmem:[%s1796_s2 + $0x50] sm:$0xff]  ;;  %v359_v29 = vld [vmem:[%s1796_s2 + $0x58] sm:$0xff] }
  0x5b   : > { %518 = vmatpush.bf16.msra.mxu0 %v366_v9  ;;  %1147 = vmatpush.bf16.msra.mxu1 %v366_v9  ;;  %v361_v30 = vld [vmem:[%s1796_s2 + $0x68] sm:$0xff]  ;;  %v360_v31 = vld [vmem:[%s1796_s2 + $0x60] sm:$0xff]  ;;  %v1092_v33 = vld [vmem:[%s1795_s1 + $0x18] sm:$0xff] }
  0x5c   : > { %1148 = vmatpush.bf16.msra.mxu2 %v366_v9  ;;  %1149 = vmatpush.bf16.msra.mxu3 %v366_v9  ;;  %v1090_v32 = vld [vmem:[%s1795_s1 + $0x8] sm:$0xff]  ;;  %v1096_v35 = vld [vmem:[%s1795_s1 + $0x38] sm:$0xff]  ;;  %v362_v36 = vld [vmem:[%s1796_s2 + $0x70] sm:$0xff] }
  0x5d   : > { %385 = vperm.xlu1 %1243, %v351_v13   ;;  %375 = vperm.xlu0 %1242, %v349_v14   ;;  %v1094_v34 = vld [vmem:[%s1795_s1 + $0x28] sm:$0xff]  ;;  %v363_v37 = vld [vmem:[%s1796_s2 + $0x78] sm:$0xff]  ;;  %v610_v52 = vld [vmem:[#allocation2 + $0x30] sm:$0xff] }
  0x5e   : > { %v614_v53 = vld [vmem:[#allocation2 + $0x50] sm:$0xff]  ;;  %v626_v57 = vld [vmem:[#allocation3 + $0x28] sm:$0xff]  ;;  %v618_v8 = vld [vmem:[#allocation2 + $0x40] sm:$0xff] }
  0x5f   : > { %519 = vmatpush.bf16.msra.mxu0 %v365_v15  ;;  %1150 = vmatpush.bf16.msra.mxu1 %v365_v15  ;;  %v630_v58 = vld [vmem:[#allocation3 + $0x48] sm:$0xff]  ;;  %v622_v9 = vld [vmem:[#allocation2 + $0x60] sm:$0xff] }
  0x60   : > { %1151 = vmatpush.bf16.msra.mxu2 %v365_v15  ;;  %1152 = vmatpush.bf16.msra.mxu3 %v365_v15  ;;  %v634_v14 = vld [vmem:[#allocation3 + $0x20] sm:$0xff] }
  0x61   : > { %395 = vperm.xlu2 %1244, %v353_v19   ;;  %v638_v15 = vld [vmem:[#allocation3] sm:$0xff] }
  0x63   : > { %520 = vmatpush.bf16.msra.mxu0 %v364_v18  ;;  %1153 = vmatpush.bf16.msra.mxu1 %v364_v18 }
  0x64   : > { %1154 = vmatpush.bf16.msra.mxu2 %v364_v18  ;;  %1155 = vmatpush.bf16.msra.mxu3 %v364_v18 }
  0x65   : > { %405 = vperm.xlu1 %1243, %v355_v20   ;;  %400 = vperm.xlu0 %1242, %v354_v21  }
  0x66   : > { %1073 = vmatmul.msk.bf16.vlgmr.msra.gmra.mxu0 %vm488_vm0, %v1089_v22  ;;  %1075 = vmatmul.msk.bf16.vlgmr.msra.gmra.mxu1 %vm488_vm0, %v1091_v23  ;;  %v611_v23 = vld [vmem:[#allocation2] sm:$0xff] }
  0x67   : > { %1077 = vmatmul.msk.bf16.vlgmr.msra.gmra.mxu2 %vm488_vm0, %v1093_v24  ;;  %1079 = vmatmul.msk.bf16.vlgmr.msra.gmra.mxu3 %vm488_vm0, %v1095_v25  ;;  %v627_v24 = vld [vmem:[#allocation3 + $0x68] sm:$0xff] }
  0x69   : > { %410 = vperm.xlu2 %1244, %v356_v26  }
  0x6d   : > { %420 = vperm.xlu1 %1243, %v358_v27   ;;  %415 = vperm.xlu0 %1242, %v357_v28  }
  0x71   : > { %425 = vperm.xlu2 %1244, %v359_v29  }
  0x75   : > { %435 = vperm.xlu1 %1243, %v361_v30   ;;  %430 = vperm.xlu0 %1242, %v360_v31   ;;  %v615_v31 = vld [vmem:[#allocation2 + $0x68] sm:$0xff] }
  0x76   : > { %1074 = vmatmul.msk.bf16.gmra.mxu0 %vm488_vm0, %v1090_v32  ;;  %1076 = vmatmul.msk.bf16.gmra.mxu1 %vm488_vm0, %v1092_v33 }
  0x77   : > { %1078 = vmatmul.msk.bf16.gmra.mxu2 %vm488_vm0, %v1094_v34  ;;  %1080 = vmatmul.msk.bf16.gmra.mxu3 %vm488_vm0, %v1096_v35 }
  0x79   : > { %440 = vperm.xlu2 %1244, %v362_v36   ;;  %v631_v36 = vld [vmem:[#allocation3 + $0x30] sm:$0xff] }
  0x7d   : > { %445 = vperm.xlu0 %1242, %v363_v37  }
  0xb3   : > { %v391_v41 = vpop.permute.xlu2 %390 }
  0xbb   : > { %v396_v44 = vpop.permute.xlu2 %395 }
  0xc3   : > { %v411_v51 = vpop.permute.xlu2 %410 }
  0xc7   : > { %v371_v38 = vpop.permute.xlu0 %370  ;;  %v1616_v39 = vpop.permute.xlu1 %380 }
  0xcb   : > { %v1635_v18 = vpop.permute.xlu2 %425 }
  0xcf   : > { %v376_v40 = vpop.permute.xlu0 %375  ;;  %v1618_v42 = vpop.permute.xlu1 %385 }
  0xd7   : > { %v1620_v43 = vpop.permute.xlu0 %400  ;;  %v1622_v45 = vpop.permute.xlu1 %405 }
  0xdf   : > { %v416_v46 = vpop.permute.xlu0 %415  ;;  %v1626_v56 = vpop.permute.xlu1 %420 }
  0xe3   : > { %v522_v47 = vpop.f32.mrf.mxu0  ;;  %v532_v48 = vpop.f32.mrf.mxu1 }
  0xe4   : > { %v523_v49 = vadd.f32 %v522_v47, %v371_v38  ;;  %v533_v50 = vadd.f32 %v532_v48, %v391_v41 }
  0xe6   : > { %v562_v54 = vmax.f32 %v523_v49, 0.0  ;;  %v1624_v55 = vmax.f32 %v533_v50, 0.0 }
  0xe7   : > { %v431_v63 = vpop.permute.xlu0 %430  ;;  %v436_v26 = vpop.permute.xlu1 %435 }
  0xe8   : > { %v642_v59 = vadd.f32 %v610_v52, %v562_v54  ;;  %v658_v60 = vmul.f32 %v562_v54, %v562_v54  ;;  %v646_v61 = vadd.f32 %v614_v53, %v1624_v55  ;;  %v662_v62 = vmul.f32 %v1624_v55, %v1624_v55 }
  0xea   : > { %v674_v0 = vadd.f32 %v658_v60, %v626_v57  ;;  %690 = vst [vmem:[#allocation2 + $0x30] sm:$0xff] %v642_v59  ;;  %v678_v1 = vadd.f32 %v662_v62, %v630_v58  ;;  %v542_v2 = vpop.f32.mrf.mxu2  ;;  %v552_v3 = vpop.f32.mrf.mxu3  ;;  %v639_v62 = vld [vmem:[#allocation3 + $0x8] sm:$0xff] }
  0xeb   : > { %694 = vst [vmem:[#allocation2 + $0x50] sm:$0xff] %v646_v61  ;;  %v543_v4 = vadd.f32 %v542_v2, %v411_v51  ;;  %v553_v5 = vadd.f32 %v552_v3, %v431_v63  ;;  %v524_v6 = vpop.f32.mrf.mxu0  ;;  %v534_v7 = vpop.f32.mrf.mxu1  ;;  %v619_v51 = vld [vmem:[#allocation2 + $0x20] sm:$0xff] }
  0xec   : > { %706 = vst [vmem:[#allocation3 + $0x28] sm:$0xff] %v674_v0  ;;  %v525_v10 = vadd.f32 %v524_v6, %v376_v40  ;;  %v535_v11 = vadd.f32 %v534_v7, %v396_v44  ;;  %v441_v60 = vpop.permute.xlu2 %440  ;;  %v612_v0 = vld [vmem:[#allocation2 + $0x58] sm:$0xff] }
  0xed   : > { %710 = vst [vmem:[#allocation3 + $0x48] sm:$0xff] %v678_v1  ;;  %v1631_v12 = vmax.f32 %v543_v4, 0.0  ;;  %v1633_v13 = vmax.f32 %v553_v5, 0.0  ;;  %v628_v5 = vld [vmem:[#allocation3 + $0x10] sm:$0xff] }
  0xee   : > { %v563_v16 = vmax.f32 %v525_v10, 0.0  ;;  %v567_v17 = vmax.f32 %v535_v11, 0.0  ;;  %v616_v11 = vld [vmem:[#allocation2 + $0x8] sm:$0xff] }
  0xef   : > { %v650_v19 = vadd.f32 %v618_v8, %v1631_v12  ;;  %v666_v20 = vmul.f32 %v1631_v12, %v1631_v12  ;;  %v654_v21 = vadd.f32 %v622_v9, %v1633_v13  ;;  %v670_v22 = vmul.f32 %v1633_v13, %v1633_v13 }
  0xf0   : > { %v659_v25 = vmul.f32 %v563_v16, %v563_v16  ;;  %v1100_v29 = vpack.c.bf16 %v563_v16, %v562_v54  ;;  %v643_v30 = vadd.f32 %v611_v23, %v563_v16  ;;  %v663_v32 = vmul.f32 %v567_v17, %v567_v17  ;;  %v635_v54 = vld [vmem:[#allocation3 + $0x78] sm:$0xff] }
  0xf1   : > { %v682_v27 = vadd.f32 %v666_v20, %v634_v14  ;;  %698 = vst [vmem:[#allocation2 + $0x40] sm:$0xff] %v650_v19  ;;  %v686_v28 = vadd.f32 %v670_v22, %v638_v15  ;;  %v1110_v44 = vpack.c.bf16 %v567_v17, %v1624_v55  ;;  %v647_v49 = vadd.f32 %v615_v31, %v567_v17  ;;  %v632_v15 = vld [vmem:[#allocation3 + $0x70] sm:$0xff]  ;;  %v636_v22 = vld [vmem:[#allocation3 + $0x18] sm:$0xff] }
  0xf2   : > { %702 = vst [vmem:[#allocation2 + $0x60] sm:$0xff] %v654_v21  ;;  %v544_v33 = vpop.f32.mrf.mxu2  ;;  %v554_v34 = vpop.f32.mrf.mxu3  ;;  %v675_v35 = vadd.f32 %v659_v25, %v627_v24  ;;  %v679_v53 = vadd.f32 %v663_v32, %v631_v36  ;;  %v620_v19 = vld [vmem:[#allocation2 + $0x10] sm:$0xff]  ;;  %v624_v25 = vld [vmem:[#allocation2 + $0x78] sm:$0xff] }
  0xf3   : > { %714 = vst [vmem:[#allocation3 + $0x20] sm:$0xff] %v682_v27  ;;  %v545_v37 = vadd.f32 %v544_v33, %v416_v46  ;;  %v555_v38 = vadd.f32 %v554_v34, %v436_v26  ;;  %v527_v40 = vpop.f32.mrf.mxu0  ;;  %v537_v41 = vpop.f32.mrf.mxu1  ;;  %v613_v34 = vld [vmem:[#allocation2 + $0x18] sm:$0xff] }
  0xf4   : > { %718 = vst [vmem:[#allocation3] sm:$0xff] %v686_v28  ;;  %v528_v47 = vadd.f32 %v527_v40, %v1616_v39  ;;  %v538_v48 = vadd.f32 %v537_v41, %v1620_v43  ;;  %v623_v39 = vld [vmem:[#allocation2 + $0x70] sm:$0xff]  ;;  %v640_v28 = vld [vmem:[#allocation3 + $0x60] sm:$0xff]  ;;  %v446_v32 = vpop.permute.xlu0 %445 }
  0xf5   : > { %1101 = vst [vmem:[%s1525_s6] sm:$0xff] %v1100_v29   ;;  %v571_v50 = vmax.f32 %v545_v37, 0.0  ;;  %v575_v52 = vmax.f32 %v555_v38, 0.0  ;;  %v629_v38 = vld [vmem:[#allocation3 + $0x40] sm:$0xff] }
  0xf6   : > { %691 = vst [vmem:[#allocation2] sm:$0xff] %v643_v30  ;;  %v1647_v46 = vmax.f32 %v528_v47, 0.0  ;;  %v1651_v43 = vmax.f32 %v538_v48, 0.0  ;;  %v617_v48 = vld [vmem:[#allocation2 + $0x48] sm:$0xff] }
  0xf7   : > { %707 = vst [vmem:[#allocation3 + $0x68] sm:$0xff] %v675_v35  ;;  %v1120_v57 = vpack.c.bf16 %v571_v50, %v1631_v12  ;;  %v667_v58 = vmul.f32 %v571_v50, %v571_v50  ;;  %v651_v55 = vadd.f32 %v619_v51, %v571_v50  ;;  %v671_v59 = vmul.f32 %v575_v52, %v575_v52  ;;  %v633_v51 = vld [vmem:[#allocation3 + $0x38] sm:$0xff] }
  0xf8   : > { %1138 = vst [vmem:[%s1525_s6 + $0x10] sm:$0xff] %v1110_v44   ;;  %v1130_v63 = vpack.c.bf16 %v575_v52, %v1633_v13  ;;  %v660_v1 = vmul.f32 %v1647_v46, %v1647_v46  ;;  %v655_v4 = vadd.f32 %v623_v39, %v575_v52  ;;  %v664_v12 = vmul.f32 %v1651_v43, %v1651_v43 }
  0xf9   : > { %695 = vst [vmem:[#allocation2 + $0x68] sm:$0xff] %v647_v49  ;;  %v683_v61 = vadd.f32 %v667_v58, %v635_v54  ;;  %v687_v10 = vadd.f32 %v671_v59, %v639_v62  ;;  %v644_v14 = vadd.f32 %v612_v0, %v1647_v46  ;;  %v648_v21 = vadd.f32 %v616_v11, %v1651_v43  ;;  %v621_v54 = vld [vmem:[#allocation2 + $0x38] sm:$0xff]  ;;  %v625_v59 = vld [vmem:[#allocation2 + $0x28] sm:$0xff] }
  0xfa   : > { %711 = vst [vmem:[#allocation3 + $0x30] sm:$0xff] %v679_v53  ;;  %v547_v2 = vpop.f32.mrf.mxu2  ;;  %v557_v3 = vpop.f32.mrf.mxu3  ;;  %v680_v24 = vadd.f32 %v664_v12, %v632_v15  ;;  %v637_v58 = vld [vmem:[#allocation3 + $0x58] sm:$0xff] }
  0xfb   : > { %1140 = vst [vmem:[%s1525_s6 + $0x20] sm:$0xff] %v1120_v57   ;;  %v548_v6 = vadd.f32 %v547_v2, %v1626_v56  ;;  %v558_v7 = vadd.f32 %v557_v3, %v441_v60  ;;  %v529_v8 = vpop.f32.mrf.mxu0  ;;  %v539_v9 = vpop.f32.mrf.mxu1  ;;  %v676_v56 = vadd.f32 %v660_v1, %v628_v5 }
  0xfc   : > { %699 = vst [vmem:[#allocation2 + $0x20] sm:$0xff] %v651_v55  ;;  %v530_v13 = vadd.f32 %v529_v8, %v1618_v42  ;;  %v540_v20 = vadd.f32 %v539_v9, %v1622_v45 }
  0xfd   : > { %715 = vst [vmem:[#allocation3 + $0x78] sm:$0xff] %v683_v61  ;;  %v1662_v16 = vmax.f32 %v548_v6, 0.0  ;;  %v1664_v17 = vmax.f32 %v558_v7, 0.0 }
  0xfe   : > { %1142 = vst [vmem:[%s1525_s6 + $0x30] sm:$0xff] %v1130_v63   ;;  %v565_v23 = vmax.f32 %v530_v13, 0.0  ;;  %v569_v29 = vmax.f32 %v540_v20, 0.0 }
  0xff   : > { %703 = vst [vmem:[#allocation2 + $0x70] sm:$0xff] %v655_v4  ;;  %v668_v42 = vmul.f32 %v1662_v16, %v1662_v16  ;;  %v672_v26 = vmul.f32 %v1664_v17, %v1664_v17  ;;  %v652_v27 = vadd.f32 %v620_v19, %v1662_v16  ;;  %v656_v33 = vadd.f32 %v624_v25, %v1664_v17 }
 0x100   : > { %719 = vst [vmem:[#allocation3 + $0x8] sm:$0xff] %v687_v10  ;;  %v661_v35 = vmul.f32 %v565_v23, %v565_v23  ;;  %v1105_v41 = vpack.c.bf16 %v565_v23, %v1647_v46  ;;  %v645_v47 = vadd.f32 %v613_v34, %v565_v23  ;;  %v665_v49 = vmul.f32 %v569_v29, %v569_v29 }
 0x101   : > { %692 = vst [vmem:[#allocation2 + $0x58] sm:$0xff] %v644_v14  ;;  %v684_v45 = vadd.f32 %v668_v42, %v636_v22  ;;  %v688_v37 = vadd.f32 %v672_v26, %v640_v28  ;;  %v649_v53 = vadd.f32 %v617_v48, %v569_v29 }
 0x102   : > { %708 = vst [vmem:[#allocation3 + $0x10] sm:$0xff] %v676_v56  ;;  %v549_v30 = vpop.f32.mrf.mxu2  ;;  %v559_v31 = vpop.f32.mrf.mxu3  ;;  %v677_v50 = vadd.f32 %v661_v35, %v629_v38  ;;  %v681_v46 = vadd.f32 %v665_v49, %v633_v51 }
 0x103   : > { %696 = vst [vmem:[#allocation2 + $0x8] sm:$0xff] %v648_v21  ;;  %v550_v36 = vadd.f32 %v549_v30, %v1635_v18  ;;  %v560_v40 = vadd.f32 %v559_v31, %v446_v32  ;;  %v1115_v18 = vpack.c.bf16 %v569_v29, %v1651_v43  ;;  %v641_v43 = vld [vmem:[#allocation3 + $0x50] sm:$0xff] }
 0x104   : > { %712 = vst [vmem:[#allocation3 + $0x70] sm:$0xff] %v680_v24 }
 0x105   : > { %700 = vst [vmem:[#allocation2 + $0x10] sm:$0xff] %v652_v27  ;;  %v573_v44 = vmax.f32 %v550_v36, 0.0  ;;  %v577_v52 = vmax.f32 %v560_v40, 0.0 }
 0x106   : > { %716 = vst [vmem:[#allocation3 + $0x18] sm:$0xff] %v684_v45 }
 0x107   : > { %704 = vst [vmem:[#allocation2 + $0x78] sm:$0xff] %v656_v33  ;;  %v669_v57 = vmul.f32 %v573_v44, %v573_v44  ;;  %v1125_v55 = vpack.c.bf16 %v573_v44, %v1662_v16  ;;  %v653_v39 = vadd.f32 %v621_v54, %v573_v44  ;;  %v673_v60 = vmul.f32 %v577_v52, %v577_v52 }
 0x108   : > { %720 = vst [vmem:[#allocation3 + $0x60] sm:$0xff] %v688_v37  ;;  %v1135_v62 = vpack.c.bf16 %v577_v52, %v1664_v17  ;;  %v657_v63 = vadd.f32 %v625_v59, %v577_v52 }
 0x109   : > { %1137 = vst [vmem:[%s1525_s6 + $0x8] sm:$0xff] %v1105_v41   ;;  %v685_v61 = vadd.f32 %v669_v57, %v637_v58  ;;  %v689_v0 = vadd.f32 %v673_v60, %v641_v43 }
 0x10a   : > { %693 = vst [vmem:[#allocation2 + $0x18] sm:$0xff] %v645_v47 }
 0x10b   : > { %709 = vst [vmem:[#allocation3 + $0x40] sm:$0xff] %v677_v50 }
 0x10c   : > { %1139 = vst [vmem:[%s1525_s6 + $0x18] sm:$0xff] %v1115_v18  }
 0x10d   : > { %697 = vst [vmem:[#allocation2 + $0x48] sm:$0xff] %v649_v53 }
 0x10e   : > { %713 = vst [vmem:[#allocation3 + $0x38] sm:$0xff] %v681_v46 }
 0x10f   : > { %1141 = vst [vmem:[%s1525_s6 + $0x28] sm:$0xff] %v1125_v55  }
 0x110   : > { %701 = vst [vmem:[#allocation2 + $0x38] sm:$0xff] %v653_v39  ;;  %725 = sbr.rel (%p1081_p6) target bundleno = 476 (0x1dc), region = 44 }
 0x111   : > { %717 = vst [vmem:[#allocation3 + $0x58] sm:$0xff] %v685_v61 }
 0x112   : > { %1143 = vst [vmem:[%s1525_s6 + $0x38] sm:$0xff] %v1135_v62  }
 0x113   : > { %705 = vst [vmem:[#allocation2 + $0x28] sm:$0xff] %v657_v63 }
 0x114   : > { %721 = vst [vmem:[#allocation3 + $0x50] sm:$0xff] %v689_v0 }
 0x115   : > { %v728_v1 = vld [vmem:[#allocation2 + $0x58] sm:$0xff]  ;;  %v726_v2 = vld [vmem:[#allocation2 + $0x30] sm:$0xff]  ;;  %v727_v5 = vld [vmem:[#allocation2] sm:$0xff]  ;;  %vm774_vm1 = vcmask 7168  }
 0x116   : > { %v730_v3 = vld [vmem:[#allocation2 + $0x50] sm:$0xff]  ;;  %746 = vadd.xlane.f32.xlu1 %v728_v1  ;;  %742 = vadd.xlane.f32.xlu0 %v726_v2  ;;  %v729_v4 = vld [vmem:[#allocation2 + $0x18] sm:$0xff]  ;;  %v731_v6 = vld [vmem:[#allocation2 + $0x68] sm:$0xff] }
 0x117   : > { %750 = vadd.xlane.f32.xlu2 %v730_v3  ;;  %v733_v7 = vld [vmem:[#allocation2 + $0x48] sm:$0xff]  ;;  %v734_v9 = vld [vmem:[#allocation2 + $0x40] sm:$0xff]  ;;  %v736_v10 = vld [vmem:[#allocation2 + $0x10] sm:$0xff] }
 0x118   : > { %v732_v8 = vld [vmem:[#allocation2 + $0x8] sm:$0xff]  ;;  %v735_v11 = vld [vmem:[#allocation2 + $0x20] sm:$0xff]  ;;  %v737_v12 = vld [vmem:[#allocation2 + $0x38] sm:$0xff] }
 0x119   : > { %v739_v13 = vld [vmem:[#allocation2 + $0x70] sm:$0xff]  ;;  %v738_v14 = vld [vmem:[#allocation2 + $0x60] sm:$0xff]  ;;  %v740_v15 = vld [vmem:[#allocation2 + $0x78] sm:$0xff] }
 0x11a   : > { %v791_v16 = vld [vmem:[#allocation3 + $0x28] sm:$0xff]  ;;  %v794_v19 = vld [vmem:[#allocation3 + $0x40] sm:$0xff]  ;;  %v793_v20 = vld [vmem:[#allocation3 + $0x10] sm:$0xff] }
 0x11b   : > { %v741_v17 = vld [vmem:[#allocation2 + $0x28] sm:$0xff]  ;;  %v797_v22 = vld [vmem:[#allocation3 + $0x70] sm:$0xff]  ;;  %v798_v23 = vld [vmem:[#allocation3 + $0x38] sm:$0xff] }
 0x11c   : > { %v792_v56 = vld [vmem:[#allocation3 + $0x68] sm:$0xff]  ;;  %v796_v42 = vld [vmem:[#allocation3 + $0x30] sm:$0xff]  ;;  %v800_v24 = vld [vmem:[#allocation3 + $0x78] sm:$0xff] }
 0x11d   : > { %v795_v21 = vld [vmem:[#allocation3 + $0x48] sm:$0xff]  ;;  %v799_v25 = vld [vmem:[#allocation3 + $0x20] sm:$0xff]  ;;  %v801_v26 = vld [vmem:[#allocation3 + $0x18] sm:$0xff] }
 0x11e   : > { %748 = vadd.xlane.f32.xlu1 %v729_v4  ;;  %744 = vadd.xlane.f32.xlu0 %v727_v5  ;;  %v803_v27 = vld [vmem:[#allocation3] sm:$0xff]  ;;  %v802_v28 = vld [vmem:[#allocation3 + $0x58] sm:$0xff]  ;;  %v804_v45 = vld [vmem:[#allocation3 + $0x8] sm:$0xff] }
 0x11f   : > { %752 = vadd.xlane.f32.xlu2 %v731_v6  ;;  %v806_v29 = vld [vmem:[#allocation3 + $0x50] sm:$0xff]  ;;  %v805_v30 = vld [vmem:[#allocation3 + $0x60] sm:$0xff] }
 0x126   : > { %756 = vadd.xlane.f32.xlu1 %v733_v7  ;;  %754 = vadd.xlane.f32.xlu0 %v732_v8 }
 0x127   : > { %758 = vadd.xlane.f32.xlu2 %v734_v9 }
 0x12e   : > { %762 = vadd.xlane.f32.xlu1 %v736_v10  ;;  %760 = vadd.xlane.f32.xlu0 %v735_v11 }
 0x12f   : > { %764 = vadd.xlane.f32.xlu2 %v737_v12 }
 0x136   : > { %768 = vadd.xlane.f32.xlu1 %v739_v13  ;;  %766 = vadd.xlane.f32.xlu0 %v738_v14 }
 0x137   : > { %770 = vadd.xlane.f32.xlu2 %v740_v15 }
 0x13e   : > { %807 = vadd.xlane.f32.xlu1 %v791_v16  ;;  %772 = vadd.xlane.f32.xlu0 %v741_v17 }
 0x13f   : > { %809 = vadd.xlane.f32.xlu2 %v792_v56 }
 0x146   : > { %813 = vadd.xlane.f32.xlu1 %v794_v19  ;;  %811 = vadd.xlane.f32.xlu0 %v793_v20 }
 0x147   : > { %815 = vadd.xlane.f32.xlu2 %v795_v21 }
 0x14e   : > { %819 = vadd.xlane.f32.xlu1 %v797_v22  ;;  %817 = vadd.xlane.f32.xlu0 %v796_v42 }
 0x14f   : > { %821 = vadd.xlane.f32.xlu2 %v798_v23 }
 0x156   : > { %825 = vadd.xlane.f32.xlu1 %v800_v24  ;;  %823 = vadd.xlane.f32.xlu0 %v799_v25 }
 0x157   : > { %827 = vadd.xlane.f32.xlu2 %v801_v26 }
 0x15e   : > { %831 = vadd.xlane.f32.xlu1 %v803_v27  ;;  %829 = vadd.xlane.f32.xlu0 %v802_v28 }
 0x15f   : > { %833 = vadd.xlane.f32.xlu2 %v804_v45 }
 0x166   : > { %837 = vadd.xlane.f32.xlu1 %v806_v29  ;;  %835 = vadd.xlane.f32.xlu0 %v805_v30 }
 0x189   : > { %v747_v31 = vpop.xlane.xlu1 %746  ;;  %v743_v32 = vpop.xlane.xlu0 %742 }
 0x18a   : > { %777 = vst.msk [vmem:[%s1518_s14 + $0x10] sm:$0xff] %vm774_vm1, %v747_v31  ;;  %v751_v33 = vpop.xlane.xlu2 %750 }
 0x18b   : > { %775 = vst.msk [vmem:[%s1518_s14] sm:$0xff] %vm774_vm1, %v743_v32 }
 0x18c   : > { %779 = vst.msk [vmem:[%s1518_s14 + $0x20] sm:$0xff] %vm774_vm1, %v751_v33 }
 0x191   : > { %v749_v34 = vpop.xlane.xlu1 %748  ;;  %v745_v35 = vpop.xlane.xlu0 %744 }
 0x192   : > { %778 = vst.msk [vmem:[%s1518_s14 + $0x18] sm:$0xff] %vm774_vm1, %v749_v34  ;;  %v753_v36 = vpop.xlane.xlu2 %752 }
 0x193   : > { %776 = vst.msk [vmem:[%s1518_s14 + $0x8] sm:$0xff] %vm774_vm1, %v745_v35 }
 0x194   : > { %780 = vst.msk [vmem:[%s1518_s14 + $0x28] sm:$0xff] %vm774_vm1, %v753_v36 }
 0x199   : > { %v757_v37 = vpop.xlane.xlu1 %756  ;;  %v755_v38 = vpop.xlane.xlu0 %754 }
 0x19a   : > { %782 = vst.msk [vmem:[%s1518_s14 + $0x38] sm:$0xff] %vm774_vm1, %v757_v37  ;;  %v759_v40 = vpop.xlane.xlu2 %758 }
 0x19b   : > { %781 = vst.msk [vmem:[%s1518_s14 + $0x30] sm:$0xff] %vm774_vm1, %v755_v38 }
 0x19c   : > { %783 = vst.msk [vmem:[%s1518_s14 + $0x40] sm:$0xff] %vm774_vm1, %v759_v40 }
 0x1a1   : > { %v763_v41 = vpop.xlane.xlu1 %762  ;;  %v761_v44 = vpop.xlane.xlu0 %760 }
 0x1a2   : > { %785 = vst.msk [vmem:[%s1518_s14 + $0x50] sm:$0xff] %vm774_vm1, %v763_v41  ;;  %v765_v47 = vpop.xlane.xlu2 %764 }
 0x1a3   : > { %784 = vst.msk [vmem:[%s1518_s14 + $0x48] sm:$0xff] %vm774_vm1, %v761_v44 }
 0x1a4   : > { %786 = vst.msk [vmem:[%s1518_s14 + $0x58] sm:$0xff] %vm774_vm1, %v765_v47 }
 0x1a9   : > { %v769_v48 = vpop.xlane.xlu1 %768  ;;  %v767_v49 = vpop.xlane.xlu0 %766 }
 0x1aa   : > { %788 = vst.msk [vmem:[%s1518_s14 + $0x68] sm:$0xff] %vm774_vm1, %v769_v48  ;;  %v771_v50 = vpop.xlane.xlu2 %770 }
 0x1ab   : > { %787 = vst.msk [vmem:[%s1518_s14 + $0x60] sm:$0xff] %vm774_vm1, %v767_v49 }
 0x1ac   : > { %789 = vst.msk [vmem:[%s1518_s14 + $0x70] sm:$0xff] %vm774_vm1, %v771_v50 }
 0x1b1   : > { %v808_v51 = vpop.xlane.xlu1 %807  ;;  %v773_v18 = vpop.xlane.xlu0 %772 }
 0x1b2   : > { %839 = vst.msk [vmem:[%s1523_s27] sm:$0xff] %vm774_vm1, %v808_v51  ;;  %v810_v52 = vpop.xlane.xlu2 %809 }
 0x1b3   : > { %790 = vst.msk [vmem:[%s1518_s14 + $0x78] sm:$0xff] %vm774_vm1, %v773_v18 }
 0x1b4   : > { %840 = vst.msk [vmem:[%s1523_s27 + $0x8] sm:$0xff] %vm774_vm1, %v810_v52 }
 0x1b9   : > { %v814_v53 = vpop.xlane.xlu1 %813  ;;  %v812_v54 = vpop.xlane.xlu0 %811 }
 0x1ba   : > { %842 = vst.msk [vmem:[%s1523_s27 + $0x18] sm:$0xff] %vm774_vm1, %v814_v53  ;;  %v816_v57 = vpop.xlane.xlu2 %815 }
 0x1bb   : > { %841 = vst.msk [vmem:[%s1523_s27 + $0x10] sm:$0xff] %vm774_vm1, %v812_v54 }
 0x1bc   : > { %843 = vst.msk [vmem:[%s1523_s27 + $0x20] sm:$0xff] %vm774_vm1, %v816_v57 }
 0x1c1   : > { %v820_v46 = vpop.xlane.xlu1 %819  ;;  %v818_v58 = vpop.xlane.xlu0 %817 }
 0x1c2   : > { %845 = vst.msk [vmem:[%s1523_s27 + $0x30] sm:$0xff] %vm774_vm1, %v820_v46  ;;  %v822_v55 = vpop.xlane.xlu2 %821 }
 0x1c3   : > { %844 = vst.msk [vmem:[%s1523_s27 + $0x28] sm:$0xff] %vm774_vm1, %v818_v58 }
 0x1c4   : > { %846 = vst.msk [vmem:[%s1523_s27 + $0x38] sm:$0xff] %vm774_vm1, %v822_v55 }
 0x1c9   : > { %v826_v39 = vpop.xlane.xlu1 %825  ;;  %v824_v59 = vpop.xlane.xlu0 %823 }
 0x1ca   : > { %848 = vst.msk [vmem:[%s1523_s27 + $0x48] sm:$0xff] %vm774_vm1, %v826_v39  ;;  %v828_v60 = vpop.xlane.xlu2 %827 }
 0x1cb   : > { %847 = vst.msk [vmem:[%s1523_s27 + $0x40] sm:$0xff] %vm774_vm1, %v824_v59 }
 0x1cc   : > { %849 = vst.msk [vmem:[%s1523_s27 + $0x50] sm:$0xff] %vm774_vm1, %v828_v60 }
 0x1d1   : > { %v832_v61 = vpop.xlane.xlu1 %831  ;;  %v830_v43 = vpop.xlane.xlu0 %829 }
 0x1d2   : > { %851 = vst.msk [vmem:[%s1523_s27 + $0x60] sm:$0xff] %vm774_vm1, %v832_v61  ;;  %v834_v62 = vpop.xlane.xlu2 %833 }
 0x1d3   : > { %850 = vst.msk [vmem:[%s1523_s27 + $0x58] sm:$0xff] %vm774_vm1, %v830_v43 }
 0x1d4   : > { %852 = vst.msk [vmem:[%s1523_s27 + $0x68] sm:$0xff] %vm774_vm1, %v834_v62 }
 0x1d9   : > { %v838_v63 = vpop.xlane.xlu1 %837  ;;  %v836_v0 = vpop.xlane.xlu0 %835 }
 0x1da   : > { %854 = vst.msk [vmem:[%s1523_s27 + $0x78] sm:$0xff] %vm774_vm1, %v838_v63 }
 0x1db   : > { %853 = vst.msk [vmem:[%s1523_s27 + $0x70] sm:$0xff] %vm774_vm1, %v836_v0 }
 0x1dc PF: > { %s1083_s14 = sshll.u32 %s1361_s22, 5  ;;  %s879_s17 = sshll.u32 %s1525_s6, 4  ;;  %s880_s17 = int_to_ptr.vmem [resolvable:$true] %s879_s17 }
 0x1dd   : > { %s876_s13 = sadd.s32 %s1357_s21, %s1083_s14  ;;  %s856_s16 = scalar_lea.sflag [#allocation6], %s1503_s15 }
 0x1de   : > { %s1084_s26 = sshll.u32 %s876_s13, 2  ;;  %s1295_s21 = scalar_lea.hbm %s1797_s3, 256 }
 0x1df   : > { %s878_s11 = scalar_lea.hbm %s1797_s3, %s1084_s26 }
 0x1e0   : > { %s881_s30 = sshll.u32 %s878_s11, 4  ;;  %s882_s30 = int_to_ptr.hbm [resolvable:$true] %s881_s30 }
 0x1e1   : > { %s1289_s29 = sshra.s32 %s882_s30, 4  ;;  %s1290_s29 = int_to_ptr.hbm [resolvable:$true] %s1289_s29 }
 0x1e2   : > { %s1291_s27 = scalar_lea.hbm %s1290_s29, 64  ;;  %p1296_p11 = scmp.lt.s32.totalorder %s1290_s29, %s1797_s3 }
 0x1e3   : > { %p1292_p7 = scmp.ne.s32.totalorder %s1290_s29, %s1291_s27  ;;  %p1297_p13 = scmp.lt.s32.totalorder %s1295_s21, %s1291_s27 }
 0x1e5   : > { %p1293_p8 = pnand %p1292_p7, %p1478_p9  ;;  %p1298_p0 = por %p1297_p13, %p1296_p11 }
 0x1e7   : > { %p1294_p10 = pneg %p1293_p8 }
 0x1e9   : > { %p1299_p1 = pnand %p1298_p0, %p1294_p10 }
 0x1eb   : > { %1302 = shalt.err (!%p1299_p1)
}
 0x1ec   : > { %s1380_s15 = smov 64   ;;  %s1381_s28 = smov 128  }
 0x1ed   : > { %s1382_s12 = smov 4  }
 0x1ee   : > { %1158 = dma.vmem_to_hbm [thread:$0]  (%p1478_p9), %s880_s17, 1024, %s882_s30, %s856_s16, %s1380_s15, %s1381_s28, %s1382_s12  }
 0x1ef PF: > { %p1169_p2 = scmp.ge.s32.totalorder %s1373_s25, 2  ;;  %s902_s13 = sand.u32 1, %s1345_s18  }
 0x1f0   : > { %s903_s26 = scalar_lea.sflag [#allocation6], %s902_s13 }
 0x1f1   : > { %p1165_p4 = pnand %p1169_p2, %p1484_p12 }
 0x1f3   : > { %p1166_p3 = pneg %p1165_p4 }
 0x1f5   : > { %1340 = dma.done.wait (%p1166_p3), %s903_s26, 1024  }
 0x1f6   : > { %1342 = vsyncadd (%p1166_p3), %s903_s26, 4294966272  ;;  %s22_s25 = sadd.s32 1, %s1373_s25   ;;  %s1814_s8 = sld [smem:[#allocation10_spill]] }
 0x1f7   : > { %p19_p5 = scmp.ge.s32.totalorder %s22_s25, 6   ;;  %s1815_s20 = sld [smem:[#allocation14_spill]] }
 0x1f8   : > { %s1816_s9 = sld [smem:[#allocation11_spill]]  ;;  %s1818_s18 = smov %s1349_s19 }
 0x1f9   : > { %s1817_s17 = sld [smem:[#allocation12_spill]]  ;;  %s1820_s21 = smov %s1365_s23 }
 0x1fa   : > { %s1821_s22 = smov %s1369_s24 }
 0x1fb   :  { %21 = sbr.rel (!%p19_p5) target bundleno = 7 (0x7), region = 109 }
 0x1fc   : > { %s1819_s19 = smov %s1814_s8 }
 0x1fe   : > { %s1822_s23 = smov %s1816_s9 }
 0x1ff   : > { %s1823_s24 = smov %s1817_s17 }
 0x200   :  { %925 = vsyncpa [#allocation5], 1 }
 0x201   :  { %927 = vsyncpa [#allocation5 + $0x1], 1 }
 0x202   :  { %928 = vsyncpa [#allocation6], 1 }
 0x203   :  { %930 = vsyncpa [#allocation6 + $0x1], 1 }

</bundles_post_ra>
